<compile_context>
chip_gen: v7x
topology: tpu7x:2x2x1
jax: 0.10.0
libtpu: 0.0.40
codegen_flags: <defaults>
</compile_context>

<pallas_src>
import jax
import jax.numpy as jnp
from jax.experimental import pallas as pl
from jax.experimental.pallas import tpu as pltpu

TAU = 1.0
D = 768  # BERT hidden size


def _make_sim_kernel(n_total: int, tn: int, need_mask: bool, use_inv: bool):
    def kernel(scale_ref, q_ref, e_ref, *rest):
        # scale_ref: (1, 1) SMEM  = 1 / (||CLS_Q||_F * tau)
        # q_ref:     (M, D) VMEM  whole CLS_Q, resident across grid steps
        # e_ref:     (tn, D) VMEM tile of E (bf16 or f32)
        # [inv_ref]: (1, tn) VMEM precomputed 1/||E_row|| (only if use_inv)
        # out_ref:   (M, tn) VMEM tile of sim
        if use_inv:
            inv_ref, out_ref = rest
        else:
            (out_ref,) = rest

        ef = e_ref[...].astype(jnp.float32)              # (tn, D)

        # CLS_Q @ E_tile.T without materializing a transpose: contract over D.
        dots = jax.lax.dot_general(
            q_ref[...], ef,
            dimension_numbers=(((1,), (1,)), ((), ())),
            preferred_element_type=jnp.float32,
        )                                                # (M, tn)

        if use_inv:
            inv_row = inv_ref[...]                       # (1, tn)
        else:
            # Row norms: VALU square + XLU cross-lane reduce + EUP rsqrt —
            # all in slack units (kernel is HBM-bound).
            inv_row = jax.lax.rsqrt(jnp.sum(ef * ef, axis=1))[None, :]

        scaled = dots * (inv_row * scale_ref[0, 0])      # (M, tn)

        if need_mask:
            # Ragged last tile: zero lanes past N (they are discarded by the
            # masked store anyway; this keeps them finite/deterministic).
            col = (pl.program_id(0) * tn
                   + jax.lax.broadcasted_iota(jnp.int32, (1, tn), 1))
            scaled = jnp.where(col < n_total, scaled, 0.0)

        out_ref[...] = scaled.astype(out_ref.dtype)

    return kernel


def retrieval_similarity(cls_q: jax.Array,
                         embedded_abstract: jax.Array,
                         *,
                         tau: float = TAU,
                         tile_n_max: int | None = None,
                         inv_e_norm: jax.Array | None = None) -> jax.Array:
    """cls_q: [M, 768], embedded_abstract: [N, 768] -> sim [M, N] float32.

    embedded_abstract may be f32 or bf16 (bf16 recommended: the kernel is
    HBM-bandwidth bound).  inv_e_norm ([N] f32, = 1/||E_row||) is optional and
    worthwhile when the same E is queried many times.
    """
    M, d = cls_q.shape
    N, d2 = embedded_abstract.shape
    assert d == D and d2 == D

    e_bytes = jnp.dtype(embedded_abstract.dtype).itemsize
    if tile_n_max is None:
        tile_n_max = 2048 if e_bytes >= 4 else 4096

    # Lane-dense tile (multiple of 128):
    #  * big enough to amortize ~0.35us per grid step,
    #  * small enough to keep >= MIN_STEPS grid steps (v7x dual-TC sharding of
    #    the "parallel" axis + pipeline overlap),
    #  * double-buffered tiles stay far inside v7x's 64 MiB VMEM.
    MIN_STEPS = 8
    tn = pl.cdiv(pl.cdiv(N, MIN_STEPS), 128) * 128
    tn = max(128, min(tn, tile_n_max))
    grid_n = pl.cdiv(N, tn)
    need_mask = (N % tn) != 0
    use_inv = inv_e_norm is not None

    # 1 / (||CLS_Q||_F * tau): one scalar, computed once here (SMEM), not per tile.
    q32 = cls_q.astype(jnp.float32)
    inv_scale = (jax.lax.rsqrt(jnp.sum(q32 * q32)) / tau).reshape(1, 1)

    in_specs = [
        pl.BlockSpec(memory_space=pltpu.MemorySpace.SMEM),   # inv_scale
        pl.BlockSpec((M, D), lambda i: (0, 0)),              # CLS_Q (resident)
        # E tile, streamed; if profiling shows exposed DMA, add
        # pipeline_mode=pl.Buffered(3) here (costs one extra tn x D buffer).
        pl.BlockSpec((tn, D), lambda i: (i, 0)),
    ]
    args = [inv_scale, cls_q, embedded_abstract]
    if use_inv:
        in_specs.append(pl.BlockSpec((1, tn), lambda i: (0, i)))
        args.append(jnp.asarray(inv_e_norm, jnp.float32).reshape(1, N))

    cost = pl.CostEstimate(
        flops=2 * M * N * D,
        transcendentals=0 if use_inv else N,
        bytes_accessed=(M * D * 4 + N * D * e_bytes + M * N * 4
                        + (N * 4 if use_inv else 0)),
    )

    return pl.pallas_call(
        _make_sim_kernel(N, tn, need_mask, use_inv),
        out_shape=jax.ShapeDtypeStruct((M, N), jnp.float32),
        grid=(grid_n,),
        in_specs=in_specs,
        out_specs=pl.BlockSpec((M, tn), lambda i: (0, i)),
        compiler_params=pltpu.CompilerParams(
            dimension_semantics=("parallel",),
            # <= ~48 MiB keeps headroom on v7x's 64 MiB physical VMEM; our
            # worst-case double-buffered E tile is ~12 MiB.
            vmem_limit_bytes=48 * 1024 * 1024,
        ),
        cost_estimate=cost,
    )(*args)


def _reference(cls_q, embedded_abstract_f32, tau=TAU):
    dots = jnp.dot(cls_q, embedded_abstract_f32.T,
                   precision=jax.lax.Precision.HIGHEST)
    q_norm = jnp.sqrt(jnp.sum(cls_q * cls_q))
    e_norm = jnp.sqrt(jnp.sum(embedded_abstract_f32 * embedded_abstract_f32, axis=1))
    return dots / (q_norm * e_norm[None, :]) / tau


if __name__ == "__main__":
    key = jax.random.PRNGKey(0)
    k_q, k_e, k_w, k_b = jax.random.split(key, 4)

    M = 1    # tokenizer(Q[0]) yields a single query -> pooler_output is [1, 768]
    N = 600  # number of embedded abstracts ("size"); exercises tiling + ragged tail

    # Synthetic stand-in for BERT pooler_output (checkpoint not loadable in-script).
    cls_q = jax.random.normal(k_q, (M, D), dtype=jnp.float32)
    e_f32 = jax.random.normal(k_e, (N, D), dtype=jnp.float32)
    # E is stored once in bf16 outside the query path (halves the HBM stream
    # the kernel is bound by); norms/matmul still accumulate in f32 in-kernel.
    e_bf16 = e_f32.astype(jnp.bfloat16)

    # Deterministic init of the module's nn.Linear(768, 2) parameters (declared
    # in __init__ but unused in forward, so they do not enter the kernel).
    linear_w = jax.random.normal(k_w, (2, D), dtype=jnp.float32) * 0.02
    linear_b = jnp.zeros((2,), dtype=jnp.float32)

    ref = _reference(cls_q, e_bf16.astype(jnp.float32))

    # Path 1: row norms computed in-kernel (single-query / fresh-E case).
    sim = jax.block_until_ready(retrieval_similarity(cls_q, e_bf16))
    assert sim.shape == (M, N)
    assert jnp.allclose(sim, ref, atol=1e-4, rtol=1e-4), "mismatch vs reference"

    # Path 2: repeated-query case — 1/||E_row|| precomputed once, streamed.
    inv_e = jax.lax.rsqrt(jnp.sum(e_bf16.astype(jnp.float32) ** 2, axis=1))
    sim2 = jax.block_until_ready(
        retrieval_similarity(cls_q, e_bf16, inv_e_norm=inv_e))
    assert jnp.allclose(sim2, ref, atol=1e-4, rtol=1e-4), "mismatch (precomputed norms)"

    print("KERNEL_OK")
</pallas_src>

<mosaic_0001>
module attributes {stable_mosaic.version = 11 : i64} {
  func.func @kernel(%arg0: i32, %arg1: memref<1x1xf32, #tpu.memory_space<smem>>, %arg2: memref<1x768xf32, #tpu.memory_space<vmem>>, %arg3: memref<128x768xbf16, #tpu.memory_space<vmem>>, %arg4: memref<1x128xf32, #tpu.memory_space<vmem>>) attributes {dimension_semantics = [#tpu.dimension_semantics<parallel>], iteration_bounds = array<i64: 5>, scalar_prefetch = 0 : i64, scratch_operands = 0 : i64, tpu.core_type = #tpu.core_type<tc>, window_params = [{transform_indices = @transform_0, window_bounds = array<i64: 1, 1>}, {pipeline_mode = #tpu.pipeline_mode<synchronous>, transform_indices = @transform_1, window_bounds = array<i64: 1, 768>}, {transform_indices = @transform_2, window_bounds = array<i64: 128, 768>}, {transform_indices = @transform_3, window_bounds = array<i64: 1, 128>}]} {
    %c0 = arith.constant 0 : index
    %c0_0 = arith.constant 0 : index
    %0 = vector.load %arg3[%c0, %c0_0] : memref<128x768xbf16, #tpu.memory_space<vmem>>, vector<128x768xbf16>
    %1 = arith.extf %0 : vector<128x768xbf16> to vector<128x768xf32>
    %c0_1 = arith.constant 0 : index
    %c0_2 = arith.constant 0 : index
    %2 = vector.load %arg2[%c0_1, %c0_2] : memref<1x768xf32, #tpu.memory_space<vmem>>, vector<1x768xf32>
    %cst = arith.constant dense<0.000000e+00> : vector<1x128xf32>
    %3 = tpu.matmul %2, %1, %cst {dimension_numbers = #tpu.dot_dimension_numbers<[1], [1], [0], [0], [0, 0, 1, 0], [], []>} : vector<1x768xf32>, vector<128x768xf32>, vector<1x128xf32> -> vector<1x128xf32>
    %4 = arith.mulf %1, %1 : vector<128x768xf32>
    %cst_3 = arith.constant dense<0.000000e+00> : vector<128xf32>
    %5 = vector.multi_reduction <add>, %4, %cst_3 [1] : vector<128x768xf32> to vector<128xf32>
    %6 = math.rsqrt %5 : vector<128xf32>
    %7 = vector.shape_cast %6 : vector<128xf32> to vector<1x128xf32>
    %c0_4 = arith.constant 0 : index
    %c0_5 = arith.constant 0 : index
    %8 = memref.load %arg1[%c0_4, %c0_5] : memref<1x1xf32, #tpu.memory_space<smem>>
    %9 = vector.broadcast %8 : f32 to vector<1x128xf32>
    %10 = arith.mulf %7, %9 : vector<1x128xf32>
    %11 = arith.mulf %3, %10 : vector<1x128xf32>
    %c128_i32 = arith.constant 128 : i32
    %12 = arith.muli %arg0, %c128_i32 : i32
    %13 = tpu.iota {dimensions = array<i32: 1>} : vector<1x128xi32>
    %14 = vector.broadcast %12 : i32 to vector<1x128xi32>
    %15 = arith.addi %14, %13 : vector<1x128xi32>
    %c600_i32 = arith.constant 600 : i32
    %16 = vector.broadcast %c600_i32 : i32 to vector<1x128xi32>
    %17 = arith.cmpi slt, %15, %16 : vector<1x128xi32>
    %cst_6 = arith.constant 0.000000e+00 : f32
    %18 = vector.broadcast %cst_6 : f32 to vector<1x128xf32>
    %19 = arith.select %17, %11, %18 : vector<1x128xi1>, vector<1x128xf32>
    %c0_7 = arith.constant 0 : index
    %c0_8 = arith.constant 0 : index
    %20 = vector.load %arg4[%c0_7, %c0_8] : memref<1x128xf32, #tpu.memory_space<vmem>>, vector<1x128xf32>
    tpu.vector_store %arg4[%c0_7, %c0_8], %19 {strides = array<i32>} : memref<1x128xf32, #tpu.memory_space<vmem>>, vector<1x128xf32>,
    return
  }
  func.func @transform_0(%arg0: i32) -> (i32, i32) {
    %c0_i32 = arith.constant 0 : i32
    %c0_i32_0 = arith.constant 0 : i32
    %c0_i32_1 = arith.constant 0 : i32
    return %c0_i32, %c0_i32_0 : i32, i32
  }
  func.func @transform_1(%arg0: i32) -> (i32, i32) {
    %c0_i32 = arith.constant 0 : i32
    %c0_i32_0 = arith.constant 0 : i32
    %c0_i32_1 = arith.constant 0 : i32
    return %c0_i32, %c0_i32_0 : i32, i32
  }
  func.func @transform_2(%arg0: i32) -> (i32, i32) {
    %c0_i32 = arith.constant 0 : i32
    %c0_i32_0 = arith.constant 0 : i32
    return %arg0, %c0_i32 : i32, i32
  }
  func.func @transform_3(%arg0: i32) -> (i32, i32) {
    %c0_i32 = arith.constant 0 : i32
    %c0_i32_0 = arith.constant 0 : i32
    return %c0_i32, %arg0 : i32, i32
  }
}

</mosaic_0001>

<bundles_post_ra>
// kernel: tpu_custom_call.1
= control target key start
LH: loop header
LB: loop body
LE: loop exit
PB: predicated region body
PF: predicated region fallthrough
CT: control target
= control target key end

     0   :  { %s2214_s0 = inlined_call_operand.<no memory space> [shape: f32[1,1], index: 0, kind: input, shape index: {}]   ;;  %s2215_s1 = inlined_call_operand.hbm [shape: f32[1,768], index: 1, kind: input, shape index: {}]   ;;  %s2216_s2 = inlined_call_operand.hbm [shape: bf16[600,768], index: 2, kind: input, shape index: {}]   ;;  %s2217_s3 = inlined_call_operand.hbm [shape: f32[1,600], index: 3, kind: output, shape index: {}]  }
   0x1   :  { %8 = sst [smem:[#allocation2]] %s2214_s0 }
   0x2   :  { %9 = vsyncpa [#allocation4], 0 }
   0x3   :  { %10 = vsyncpa [#allocation7], 0 }
   0x4   :  { %12 = vsyncpa [#allocation7 + $0x1], 0 }
   0x5   :  { %13 = vsyncpa [#allocation5], 0 }
   0x6   :  { %15 = vsyncpa [#allocation5 + $0x1], 0  ;;  %s1526_s14 = smov 0   ;;  %s1528_s15 = smov 0  }
   0x7   :  { %s1530_s16 = smov 0   ;;  %s1532_s17 = smov 0  }
   0x8 LB: > { %s1547_s0 = sadd.s32 4294967295, %s1496_s17   ;;  %s1070_s18 = sadd.s32 4294967294, %s1496_s17   ;;  %s1496_s17 = sphi %s1532_s17, %s2275_s17   ;;  %s1492_s16 = sphi %s1530_s16, %s2274_s16   ;;  %s1488_s15 = sphi %s1528_s15, %s2273_s15   ;;  %s1484_s14 = sphi %s1526_s14, %s2272_s14  }
   0x9   : > { %s1551_s19 = sadd.s32 1, %s1496_s17   ;;  %s70_s20 = sadd.s32 1, %s1492_s16 }
   0xa   : > { %s67_s21 = ssub.s32 %s1496_s17, %s1551_s19  ;;  %p77_p0 = scmp.ne.s32.totalorder %s1492_s16, %s1488_s15 }
   0xb   : > { %p68_p1 = scmp.eq.s32.totalorder %s67_s21, 0  ;;  %p78_p2 = scmp.eq.s32.totalorder %s1496_s17, 0 }
   0xc   : > { %p83_p3 = scmp.ne.s32.totalorder %s1488_s15, %s1484_s14  ;;  %p2218_p4 = scmp.eq.s32.totalorder %s1547_s0, 0 }
   0xd   : > { %s1563_s22 = scalar_select %p68_p1, %s1492_s16, %s70_s20  }
   0xe   : > { %p1565_p5 = por %p78_p2, %p77_p0  ;;  %p1571_p6 = por %p2218_p4, %p83_p3 }
   0xf   : > { %p107_p7 = scmp.eq.s32.totalorder %s1547_s0, 4  ;;  %p113_p8 = scmp.eq.s32.totalorder %s1070_s18, 4 }
  0x10   : > { %s2227_s23 = scalar_select %p1565_p5, 1, 0 }
  0x11   : > { %s2228_s24 = scalar_select %p1571_p6, 1, 0 }
  0x12   : > { %p1071_p9 = scmp.ge.s32.totalorder %s1496_s17, 1  ;;  %p120_p10 = scmp.lt.s32.totalorder %s1496_s17, 6 }
  0x13   : > { %p1578_p11 = por %p107_p7, %p77_p0  ;;  %p1582_p12 = por %p113_p8, %p83_p3 }
  0x14   : > { %p1586_p13 = pnand %p1071_p9, %p120_p10  ;;  %s1498_s28 = smov [#allocation3]  }
  0x15   : > { %s2229_s25 = scalar_select %p1578_p11, 1, 0 }
  0x16   : > { %s2230_s26 = scalar_select %p1582_p12, 1, 0 }
  0x17   : > { %s2231_s27 = scalar_select %p1586_p13, 1, 0 }
  0x18   : > { %p1244_p1 = pneg %p1586_p13  ;;  %s136_s29 = sshll.u32 %s1498_s28, 4  ;;  %s137_s29 = int_to_ptr.vmem [resolvable:$true] %s136_s29 }
  0x19   : > { %s1370_s6 = scalar_lea.hbm %s2215_s1, 96 }
  0x1a   : > { %p1594_p2 = pnand %p1244_p1, %p2218_p4  ;;  %p1371_p0 = scmp.ne.s32.totalorder %s2215_s1, %s1370_s6 }
  0x1b   : > { %p1377_p9 = scmp.lt.u32.totalorder %s1370_s6, %s2215_s1 }
  0x1c   : > { %p1372_p3 = pneg %p1594_p2 }
  0x1e   : > { %p1373_p7 = pnand %p1372_p3, %p1371_p0 }
  0x20   : > { %p1374_p8 = pneg %p1373_p7 }
  0x22   : > { %p1379_p10 = pnand %p1377_p9, %p1374_p8 }
  0x24   : > { %1382 = shalt.err (!%p1379_p10)
}
  0x25   : > { %s1383_s11 = scalar_lea.vmem %s137_s29, 96  ;;  %p1391_p11 = scmp.lt.s32.totalorder %s137_s29, %s137_s29 }
  0x26   : > { %p1384_p1 = scmp.ne.s32.totalorder %s137_s29, %s1383_s11  ;;  %p1392_p6 = scmp.lt.s32.totalorder %s1383_s11, %s1383_s11 }
  0x28   : > { %p1386_p4 = pnand %p1384_p1, %p1372_p3  ;;  %p1393_p13 = por %p1392_p6, %p1391_p11 }
  0x2a   : > { %p1387_p12 = pneg %p1386_p4 }
  0x2c   : > { %p1394_p5 = pnand %p1393_p13, %p1387_p12 }
  0x2e   : > { %1397 = shalt.err (!%p1394_p5)
}
  0x2f   : > { %1247 = dma.hbm_to_vmem [thread:$0]  (!%p1594_p2), %s2215_s1, 96, %s137_s29, [#allocation4]  }
  0x30   : > { %p1073_p0 = scmp.ge.s32.totalorder %s1496_s17, 5 }
  0x31   : > { %p2233_p7 = scmp.ne.s32.totalorder (!%p1073_p0), %s2227_s23, 0 }
  0x32   : > { %143 = sbr.rel (%p1073_p0) target bundleno = 93 (0x5d), region = 24 }
  0x39   : > { %146 = sbr.rel (!%p2233_p7) target bundleno = 93 (0x5d), region = 28  ;;  %s147_s18 = sand.u32 (%p2233_p7), 1, %s1492_s16  }
  0x3a   : > { %s1074_s20 = sshll.u32 (%p2233_p7), %s1496_s17, 4  ;;  %s1234_s21 = smul.u32 (%p2233_p7), 384, %s147_s18 }
  0x3b   : > { %s153_s28 = ssub.s32 (%p2233_p7), 75, %s1074_s20  ;;  %s1622_s5 = scalar_lea.sflag (%p2233_p7), [#allocation7], %s147_s18 }
  0x3c   : > { %p154_p4 = scmp.lt.s32.totalorder (%p2233_p7), %s153_s28, 16  ;;  %s151_s29 = scalar_lea.vmem (%p2233_p7), [#allocation6], %s1234_s21 }
  0x40   : > { %s2277_s28 = smov (!%p154_p4, %s153_s28), 16 }
  0x41   : > { %s1619_s4 = smul.u32 384, %s2277_s28 }
  0x43   : > { %s159_s30 = ssub.s32 6144, %s1619_s4 }
  0x44   : > { %160 = vsyncadd %s1622_s5, %s159_s30  ;;  %p1077_p5 = scmp.ne.s32.totalorder %s1619_s4, 0  ;;  %s1235_s23 = smul.u32 6144, %s1496_s17 }
  0x45   : > { %s166_s6 = sshll.u32 %s151_s29, 4  ;;  %s1402_s13 = scalar_lea.hbm %s2216_s2, 28800  ;;  %s1632_s6 = int_to_ptr.vmem [resolvable:$true] %s166_s6 }
  0x46   : > { %s1630_s9 = scalar_lea.hbm %s2216_s2, %s1235_s23 }
  0x47   : > { %s1398_s10 = scalar_lea.hbm %s1630_s9, %s1619_s4  ;;  %p1403_p13 = scmp.lt.u32.totalorder %s1630_s9, %s2216_s2 }
  0x48   : > { %p1399_p6 = scmp.ne.s32.totalorder %s1630_s9, %s1398_s10  ;;  %p1404_p2 = scmp.lt.u32.totalorder %s1402_s13, %s1398_s10 }
  0x49   : > { %p1406_p8 = scmp.lt.u32.totalorder %s1398_s10, %s1630_s9 }
  0x4a   : > { %p1400_p11 = pnand %p1399_p6, %p1077_p5  ;;  %p1405_p3 = por %p1404_p2, %p1403_p13 }
  0x4c   : > { %p1401_p12 = pneg %p1400_p11  ;;  %p1407_p9 = por %p1406_p8, %p1405_p3 }
  0x4e   : > { %p1408_p10 = pnand %p1407_p9, %p1401_p12 }
  0x50   : > { %1411 = shalt.err (!%p1408_p10)
}
  0x51   : > { %s1412_s21 = scalar_lea.vmem %s1632_s6, %s1619_s4  ;;  %s1499_s28 = smov [#allocation6]  }
  0x52   : > { %p1413_p1 = scmp.ne.s32.totalorder %s1632_s6, %s1412_s21  ;;  %s1416_s30 = sshll.u32 %s1499_s28, 4  ;;  %s1417_s30 = int_to_ptr.vmem [resolvable:$false] %s1416_s30 }
  0x53   : > { %s1418_s29 = scalar_lea.vmem %s1417_s30, 12288  ;;  %p1419_p4 = scmp.lt.s32.totalorder %s1632_s6, %s1417_s30 }
  0x54   : > { %p1414_p0 = pnand %p1413_p1, %p1077_p5  ;;  %p1420_p6 = scmp.lt.s32.totalorder %s1418_s29, %s1412_s21 }
  0x56   : > { %p1415_p7 = pneg %p1414_p0  ;;  %p1421_p11 = por %p1420_p6, %p1419_p4 }
  0x58   : > { %p1422_p13 = pnand %p1421_p11, %p1415_p7 }
  0x5a   : > { %1425 = shalt.err (!%p1422_p13)
}
  0x5b   : > { %s1500_s23 = smov 384   ;;  %s1501_s7 = smov 24  }
  0x5c   : > { %172 = dma.hbm_to_vmem [thread:$0]  (%p1077_p5), %s1630_s9, %s1619_s4, %s1632_s6, %s1622_s5, %s1500_s23, %s1500_s23, %s1501_s7  }
  0x5d PF: > { %p2234_p12 = scmp.ne.s32.totalorder %s2231_s27, 0 }
  0x5f   : > { %178 = sbr.rel (%p2234_p12) target bundleno = 472 (0x1d8), region = 32 }
  0x66   : > { %p2235_p2 = scmp.eq.s32.totalorder %s1547_s0, 0 }
  0x68   : > { %1471 = dma.done.wait (%p2235_p2), [#allocation4], 96   ;;  %p2236_p3 = pmov %p2235_p2 }
  0x69   : > { %s1666_s8 = sand.u32 1, %s1488_s15   ;;  %p2237_p5 = scmp.ne.s32.totalorder %s2228_s24, 0 }
  0x6a   : > { %1473 = vsyncadd (%p2236_p3), [#allocation4], 4294967200  ;;  %s1236_s10 = smul.u32 384, %s1666_s8  ;;  %s185_s11 = scalar_lea.sflag [#allocation7], %s1666_s8 }
  0x6c   : > { %s1670_s4 = scalar_lea.vmem [#allocation6], %s1236_s10 }
  0x6d   : > { %1475 = dma.done.wait (%p2237_p5), %s185_s11, 6144  }
  0x6e   : > { %1477 = vsyncadd (%p2237_p5), %s185_s11, 4294961152  ;;  %v2222_v0 = vlaneseq  ;;  %v1677_v1 = vld [vmem:[%s1670_s4 + $0x8] sm:$0xff]  ;;  %v1680_v2 = vld [vmem:[%s1670_s4 + $0x20] sm:$0xff]  ;;  %s826_s24 = sld [smem:[#allocation2]]  ;;  %vm871_vm0 = vcmask 130112   ;;  %vm878_vm1 = vcmask 195712  }
  0x6f   : > { %v1683_v3 = vld [vmem:[%s1670_s4 + $0x38] sm:$0xff]  ;;  %v1202_v5 = vcombine.high %v1677_v1, %v1680_v2  ;;  %v1203_v6 = vcombine.low %v1677_v1, %v1680_v2  ;;  %v1693_v7 = vld [vmem:[%s1670_s4 + $0x50] sm:$0xff]  ;;  %v272_v8 = vunpack.c.l.bf16 %v1680_v2  ;;  %v1699_v10 = vld [vmem:[%s1670_s4 + $0x68] sm:$0xff]  ;;  %v266_v20 = vunpack.c.l.bf16 %v1677_v1  ;;  %s1083_s27 = sshll.u32 %s1547_s0, 7  ;;  %s1084_s5 = sshll.u32 %s1547_s0, 4 }
  0x70   : > { %v1686_v4 = vshrl.u32 %v2222_v0, 7  ;;  %v1204_v9 = vcombine.high %v1683_v3, %v1693_v7  ;;  %v1702_v11 = vld [vmem:[%s1670_s4 + $0x80] sm:$0xff]  ;;  %v1705_v12 = vld [vmem:[%s1670_s4 + $0x98] sm:$0xff]  ;;  %v1708_v13 = vld [vmem:[%s1670_s4 + $0xb0] sm:$0xff]  ;;  %v1205_v21 = vcombine.low %v1683_v3, %v1693_v7  ;;  %v267_v33 = vunpack.c.h.bf16 %v1677_v1  ;;  %s209_s6 = scalar_lea.vmem [#allocation8], %s1666_s8  ;;  %s2171_s18 = scalar_lea.hbm %s2217_s3, %s1084_s5 }
  0x71   : > { %1120 = vmatprep.subr.bf16.mxu0 %v1202_v5  ;;  %v1711_v14 = vld [vmem:[%s1670_s4 + $0xc8] sm:$0xff]  ;;  %v1714_v15 = vld [vmem:[%s1670_s4 + $0xe0] sm:$0xff]  ;;  %v1717_v16 = vld [vmem:[%s1670_s4 + $0xf8] sm:$0xff]  ;;  %v1206_v22 = vcombine.high %v1699_v10, %v1702_v11  ;;  %v1207_v23 = vcombine.low %v1699_v10, %v1702_v11  ;;  %v1734_v27 = vmul.f32 %v272_v8, %v272_v8  ;;  %v1208_v28 = vcombine.high %v1705_v12, %v1708_v13  ;;  %s992_s9 = sshll.u32 %s209_s6, 4  ;;  %s980_s20 = scalar_lea.sflag [#allocation5], %s1666_s8  ;;  %s2173_s9 = int_to_ptr.vmem [resolvable:$true] %s992_s9 }
  0x72   : > { %2238 = vst [vmem:[#allocation12_spill] sm:$0xff] %v1686_v4  ;;  %1122 = vmatpush1.bf16.xpose.msra.mxu0 %v1203_v6  ;;  %v376_v17 = vsub.s32 3, %v1686_v4  ;;  %v372_v18 = vsub.s32 2, %v1686_v4  ;;  %v368_v19 = vsub.s32 1, %v1686_v4  ;;  %v1730_v24 = vld [vmem:[%s1670_s4 + $0x110] sm:$0xff]  ;;  %v216_v25 = vld [vmem:[%s1670_s4] sm:$0xff]  ;;  %v604_v58 = vmul.f32 %v266_v20, %v266_v20 }
  0x73   : > { %1124 = vmatprep.subr.bf16.mxu0 %v1204_v9  ;;  %v219_v26 = vld [vmem:[%s1670_s4 + $0x18] sm:$0xff]  ;;  %v1741_v30 = vld [vmem:[%s1670_s4 + $0x128] sm:$0xff]  ;;  %v1744_v31 = vld [vmem:[%s1670_s4 + $0x140] sm:$0xff]  ;;  %v264_v35 = vunpack.c.l.bf16 %v216_v25  ;;  %v265_v43 = vunpack.c.h.bf16 %v216_v25  ;;  %v364_v57 = vsub.s32 0, %v1686_v4  ;;  %v1805_v5 = vmul.f32 %v267_v33, %v267_v33  ;;  %s1426_s21 = scalar_lea.vmem %s2173_s9, 16  ;;  %p2270_p9 = scmp.ne.s32.totalorder %s2229_s25, 0 }
  0x74   : > { %v1746_v32 = vld [vmem:[#allocation3] sm:$0x3f]  ;;  %v1186_v36 = vcombine.high %v216_v25, %v219_v26  ;;  %v1187_v37 = vcombine.low %v216_v25, %v219_v26  ;;  %v1752_v38 = vld [vmem:[%s1670_s4 + $0x30] sm:$0xff]  ;;  %v1755_v39 = vld [vmem:[%s1670_s4 + $0x48] sm:$0xff]  ;;  %v270_v44 = vunpack.c.l.bf16 %v219_v26  ;;  %v271_v49 = vunpack.c.h.bf16 %v219_v26  ;;  %p1427_p8 = scmp.ne.s32.totalorder %s2173_s9, %s1426_s21  ;;  %s1502_s0 = smov [#allocation8]  }
  0x75   : > { %v1760_v41 = vld [vmem:[%s1670_s4 + $0x158] sm:$0xff]  ;;  %v1763_v42 = vld [vmem:[%s1670_s4 + $0x170] sm:$0xff]  ;;  %v377_v45 = vrot.slane %v1746_v32, %v376_v17  ;;  %v1776_v51 = vld [vmem:[%s1670_s4 + $0x28] sm:$0xff]  ;;  %v1188_v53 = vcombine.high %v1752_v38, %v1755_v39  ;;  %v602_v61 = vmul.f32 %v264_v35, %v264_v35  ;;  %v603_v6 = vmul.f32 %v265_v43, %v265_v43  ;;  %s1430_s28 = sshll.u32 %s1502_s0, 4  ;;  %s1431_s28 = int_to_ptr.vmem [resolvable:$false] %s1430_s28 }
  0x76   : > { %1088 = vmatprep.subr.bf16.mxu1 %v1186_v36  ;;  %v1773_v50 = vld [vmem:[%s1670_s4 + $0x10] sm:$0xff]  ;;  %v1783_v54 = vld [vmem:[%s1670_s4 + $0x40] sm:$0xff]  ;;  %v1786_v55 = vld [vmem:[%s1670_s4 + $0x58] sm:$0xff]  ;;  %v1807_v8 = vmul.f32 %v270_v44, %v270_v44  ;;  %v384_v26 = vsub.s32 5, %v1686_v4  ;;  %v1824_v33 = vrot.slane %v1746_v32, %v372_v18  ;;  %v1189_v36 = vcombine.low %v1752_v38, %v1755_v39  ;;  %p1428_p10 = pnand %p1427_p8, %p2270_p9  ;;  %s1432_s30 = scalar_lea.vmem %s1431_s28, 32 }
  0x77   : > { %1090 = vmatpush1.bf16.xpose.msra.mxu1 %v1187_v37  ;;  %526 = vmatprep.mubr.f32.mxu0 %v377_v45  ;;  %2239 = vst [vmem:[#allocation13_spill] sm:$0xff] %v1783_v54  ;;  %v1789_v56 = vld [vmem:[%s1670_s4 + $0x60] sm:$0xff]  ;;  %v1797_v62 = vld [vmem:[%s1670_s4 + $0x78] sm:$0xff]  ;;  %v1800_v63 = vld [vmem:[%s1670_s4 + $0x70] sm:$0xff]  ;;  %v268_v0 = vunpack.c.l.bf16 %v1773_v50  ;;  %v269_v9 = vunpack.c.h.bf16 %v1773_v50  ;;  %v369_v52 = vrot.slane %v1746_v32, %v368_v19  ;;  %v1887_v34 = vrot.slane %v1746_v32, %v364_v57  ;;  %p1433_p0 = scmp.lt.s32.totalorder %s2173_s9, %s1431_s28  ;;  %p1434_p7 = scmp.lt.s32.totalorder %s1432_s30, %s1426_s21 }
  0x78   : > { %v1803_v1 = vld [vmem:[%s1670_s4 + $0x88] sm:$0xff]  ;;  %1092 = vmatprep.subr.bf16.mxu1 %v1188_v53  ;;  %v1812_v17 = vld [vmem:[%s1670_s4 + $0x90] sm:$0xff]  ;;  %v1818_v25 = vld [vmem:[%s1670_s4 + $0xc0] sm:$0xff]  ;;  %2240 = vst [vmem:[#allocation14_spill] sm:$0xff] %v1824_v33  ;;  %v1190_v45 = vcombine.high %v1789_v56, %v1797_v62  ;;  %v1191_v35 = vcombine.low %v1789_v56, %v1797_v62  ;;  %v698_v40 = vadd.f32 %v603_v6, %v602_v61  ;;  %v276_v18 = vunpack.c.l.bf16 %v1752_v38  ;;  %p1429_p1 = pneg %p1428_p10 }
  0x79   : > { %v1815_v20 = vld [vmem:[%s1670_s4 + $0xa8] sm:$0xff]  ;;  %v1831_v37 = vld [vmem:[%s1670_s4 + $0xd8] sm:$0xff]  ;;  %v1834_v43 = vld [vmem:[%s1670_s4 + $0xf0] sm:$0xff]  ;;  %2241 = vst [vmem:[#allocation15_spill] sm:$0xff] %v1887_v34  ;;  %v606_v46 = vmul.f32 %v268_v0, %v268_v0  ;;  %456 = vmatprep.mubr.f32.mxu1 %v369_v52  ;;  %v277_v29 = vunpack.c.h.bf16 %v1752_v38  ;;  %v278_v19 = vunpack.c.l.bf16 %v1683_v3  ;;  %v280_v47 = vunpack.c.l.bf16 %v1783_v54  ;;  %p1435_p4 = por %p1434_p7, %p1433_p0 }
  0x7a   : > { %1126 = vmatpush1.bf16.xpose.msra.mxu0 %v1205_v21  ;;  %v609_v21 = vmul.f32 %v271_v49, %v271_v49  ;;  %v1837_v44 = vld [vmem:[%s1670_s4 + $0x108] sm:$0xff]  ;;  %v1846_v49 = vld [vmem:[%s1670_s4 + $0x120] sm:$0xff]  ;;  %v1849_v53 = vld [vmem:[%s1670_s4 + $0x138] sm:$0xff]  ;;  %v281_v57 = vunpack.c.h.bf16 %v1783_v54  ;;  %v273_v0 = vunpack.c.h.bf16 %v1680_v2  ;;  %v699_v52 = vadd.f32 %v698_v40, %v604_v58 }
  0x7b   : > { %1128 = vmatprep.subr.bf16.mxu0 %v1206_v22  ;;  %v1192_v22 = vcombine.high %v1812_v17, %v1815_v20  ;;  %v1861_v60 = vld [vmem:[%s1670_s4 + $0x150] sm:$0xff]  ;;  %v1864_v59 = vld [vmem:[%s1670_s4 + $0x168] sm:$0xff]  ;;  %v614_v38 = vmul.f32 %v276_v18, %v276_v18  ;;  %v615_v61 = vmul.f32 %v277_v29, %v277_v29  ;;  %v616_v6 = vmul.f32 %v278_v19, %v278_v19  ;;  %p1436_p6 = pnand %p1435_p4, %p1429_p1 }
  0x7c   : > { %v700_v4 = vadd.f32 %v699_v52, %v1805_v5  ;;  %v618_v34 = vmul.f32 %v280_v47, %v280_v47  ;;  %v275_v2 = vunpack.c.h.bf16 %v1776_v51  ;;  %v611_v33 = vmul.f32 %v273_v0, %v273_v0 }
  0x7d   : > { %v712_v54 = vadd.f32 %v615_v61, %v614_v38  ;;  %v282_v40 = vunpack.c.l.bf16 %v1755_v39  ;;  %v283_v29 = vunpack.c.h.bf16 %v1755_v39  ;;  %v285_v47 = vunpack.c.h.bf16 %v1693_v7 }
  0x7e   : > { %v701_v58 = vadd.f32 %v700_v4, %v606_v46  ;;  %v2242_v4 = vcombine.low %v1705_v12, %v1708_v13  ;;  %v613_v39 = vmul.f32 %v275_v2, %v275_v2  ;;  %v289_v61 = vunpack.c.h.bf16 %v1789_v56 }
  0x7f   : > { %1094 = vmatpush1.bf16.xpose.msra.mxu1 %v1189_v36  ;;  %v279_v36 = vunpack.c.h.bf16 %v1683_v3  ;;  %v274_v3 = vunpack.c.l.bf16 %v1776_v51  ;;  %v713_v18 = vadd.f32 %v712_v54, %v616_v6  ;;  %v621_v52 = vmul.f32 %v283_v29, %v283_v29 }
  0x80   : > { %1096 = vmatprep.subr.bf16.mxu1 %v1190_v45  ;;  %v1903_v45 = vrot.slane %v1746_v32, %v384_v26  ;;  %v619_v26 = vmul.f32 %v281_v57, %v281_v57  ;;  %v287_v54 = vunpack.c.h.bf16 %v1786_v55  ;;  %v290_v6 = vunpack.c.l.bf16 %v1699_v10 }
  0x81   : > { %v617_v48 = vmul.f32 %v279_v36, %v279_v36  ;;  %v612_v19 = vmul.f32 %v274_v3, %v274_v3  ;;  %v286_v36 = vunpack.c.l.bf16 %v1786_v55  ;;  %vm885_vm2 = vcmask 261312  }
  0x82   : > { %1130 = vmatpush1.bf16.xpose.msra.mxu0 %v1207_v23  ;;  %v607_v23 = vmul.f32 %v269_v9, %v269_v9  ;;  %v284_v9 = vunpack.c.l.bf16 %v1693_v7  ;;  %vm892_vm3 = vcmask 326912   ;;  %vm899_vm4 = vcmask 392512  }
  0x83   : > { %1132 = vmatprep.subr.bf16.mxu0 %v1208_v28  ;;  %v705_v28 = vadd.f32 %v609_v21, %v1807_v8  ;;  %v714_v8 = vadd.f32 %v713_v18, %v617_v48  ;;  %v620_v21 = vmul.f32 %v282_v40, %v282_v40  ;;  %v288_v48 = vunpack.c.l.bf16 %v1789_v56 }
  0x84   : > { %v702_v0 = vadd.f32 %v701_v58, %v607_v23  ;;  %v624_v3 = vmul.f32 %v286_v36, %v286_v36  ;;  %v627_v58 = vmul.f32 %v289_v61, %v289_v61  ;;  %v625_v18 = vmul.f32 %v287_v54, %v287_v54 }
  0x85   : > { %v706_v5 = vadd.f32 %v705_v28, %v1734_v27  ;;  %v2243_v27 = vcombine.high %v1711_v14, %v1714_v15  ;;  %v715_v7 = vadd.f32 %v714_v8, %v618_v34  ;;  %v719_v57 = vadd.f32 %v621_v52, %v620_v21 }
  0x86   : > { %703 = vadd.xlane.f32.xlu0 %v702_v0  ;;  %v292_v28 = vunpack.c.l.bf16 %v1800_v63  ;;  %v626_v29 = vmul.f32 %v288_v48, %v288_v48  ;;  %v628_v34 = vmul.f32 %v290_v6, %v290_v6  ;;  %v2244_v56 = vcombine.low %v1812_v17, %v1815_v20 }
  0x87   : > { %1098 = vmatpush1.bf16.xpose.msra.mxu1 %v1191_v35  ;;  %v707_v46 = vadd.f32 %v706_v5, %v611_v33  ;;  %v622_v35 = vmul.f32 %v284_v9, %v284_v9  ;;  %v291_v33 = vunpack.c.h.bf16 %v1699_v10  ;;  %v716_v23 = vadd.f32 %v715_v7, %v619_v26 }
  0x88   : > { %1100 = vmatprep.subr.bf16.mxu1 %v1192_v22  ;;  %v623_v22 = vmul.f32 %v285_v47, %v285_v47  ;;  %v726_v10 = vadd.f32 %v627_v58, %v626_v29  ;;  %v294_v26 = vunpack.c.l.bf16 %v1797_v62  ;;  %v295_v47 = vunpack.c.h.bf16 %v1797_v62 }
  0x89   : > { %v708_v38 = vadd.f32 %v707_v46, %v612_v19  ;;  %v720_v2 = vadd.f32 %v719_v57, %v622_v35  ;;  %717 = vadd.xlane.f32.xlu1 %v716_v23  ;;  %v293_v19 = vunpack.c.h.bf16 %v1800_v63  ;;  %v629_v5 = vmul.f32 %v291_v33, %v291_v33 }
  0x8a   : > { %1134 = vmatpush1.bf16.xpose.msra.mxu0 %v2242_v4  ;;  %v296_v36 = vunpack.c.l.bf16 %v1702_v11  ;;  %v2245_v0 = vcombine.high %v1818_v25, %v1831_v37  ;;  %v630_v21 = vmul.f32 %v292_v28, %v292_v28  ;;  %v297_v52 = vunpack.c.h.bf16 %v1702_v11  ;;  %v1947_v11 = vld [vmem:[%s1670_s4 + $0xa0] sm:$0xff] }
  0x8b   : > { %1136 = vmatprep.subr.bf16.mxu0 %v2243_v27  ;;  %v709_v40 = vadd.f32 %v708_v38, %v613_v39  ;;  %v721_v9 = vadd.f32 %v720_v2, %v623_v22  ;;  %v298_v4 = vunpack.c.l.bf16 %v1803_v1  ;;  %v2246_v39 = vcombine.low %v1711_v14, %v1714_v15 }
  0x8c   : > { %v727_v46 = vadd.f32 %v726_v10, %v628_v34  ;;  %v632_v54 = vmul.f32 %v294_v26, %v294_v26  ;;  %v633_v62 = vmul.f32 %v295_v47, %v295_v47  ;;  %v634_v35 = vmul.f32 %v296_v36, %v296_v36  ;;  %v1960_v47 = vld [vmem:[%s1670_s4 + $0xb8] sm:$0xff] }
  0x8d   : > { %710 = vadd.xlane.f32.xlu0 %v709_v40  ;;  %v722_v8 = vadd.f32 %v721_v9, %v624_v3  ;;  %v2247_v27 = vcombine.high %v1717_v16, %v1730_v24  ;;  %v631_v22 = vmul.f32 %v293_v19, %v293_v19  ;;  %v299_v57 = vunpack.c.h.bf16 %v1803_v1 }
  0x8e   : > { %v635_v48 = vmul.f32 %v297_v52, %v297_v52  ;;  %v728_v38 = vadd.f32 %v727_v46, %v629_v5  ;;  %v733_v61 = vadd.f32 %v633_v62, %v632_v54  ;;  %v300_v6 = vunpack.c.l.bf16 %v1812_v17 }
  0x8f   : > { %1102 = vmatpush1.bf16.xpose.msra.mxu1 %v2244_v56  ;;  %v723_v7 = vadd.f32 %v722_v8, %v625_v18  ;;  %v301_v33 = vunpack.c.h.bf16 %v1812_v17  ;;  %v636_v23 = vmul.f32 %v298_v4, %v298_v4  ;;  %v302_v3 = vunpack.c.l.bf16 %v1705_v12 }
  0x90   : > { %1104 = vmatprep.subr.bf16.mxu1 %v2245_v0  ;;  %v303_v2 = vunpack.c.h.bf16 %v1705_v12  ;;  %v304_v28 = vunpack.c.l.bf16 %v1947_v11  ;;  %v729_v40 = vadd.f32 %v728_v38, %v630_v21  ;;  %v734_v29 = vadd.f32 %v733_v61, %v634_v35  ;;  %v1978_v61 = vld [vmem:[%s1670_s4 + $0xd0] sm:$0xff] }
  0x91   : > { %724 = vadd.xlane.f32.xlu1 %v723_v7  ;;  %v638_v58 = vmul.f32 %v300_v6, %v300_v6  ;;  %v639_v34 = vmul.f32 %v301_v33, %v301_v33  ;;  %v637_v18 = vmul.f32 %v299_v57, %v299_v57  ;;  %v305_v9 = vunpack.c.h.bf16 %v1947_v11 }
  0x92   : > { %1138 = vmatpush1.bf16.xpose.msra.mxu0 %v2246_v39  ;;  %v640_v19 = vmul.f32 %v302_v3, %v302_v3  ;;  %v641_v5 = vmul.f32 %v303_v2, %v303_v2  ;;  %v2248_v17 = vcombine.low %v1818_v25, %v1831_v37  ;;  %v730_v56 = vadd.f32 %v729_v40, %v631_v22 }
  0x93   : > { %1140 = vmatprep.subr.bf16.mxu0 %v2247_v27  ;;  %v735_v10 = vadd.f32 %v734_v29, %v635_v48  ;;  %v740_v26 = vadd.f32 %v639_v34, %v638_v58  ;;  %v306_v12 = vunpack.c.l.bf16 %v1815_v20  ;;  %v2249_v36 = vcombine.high %v1834_v43, %v1837_v44 }
  0x94   : > { %v642_v0 = vmul.f32 %v304_v28, %v304_v28  ;;  %v307_v8 = vunpack.c.h.bf16 %v1815_v20  ;;  %v308_v21 = vunpack.c.l.bf16 %v1708_v13  ;;  %v309_v52 = vunpack.c.h.bf16 %v1708_v13  ;;  %731 = vadd.xlane.f32.xlu0 %v730_v56  ;;  %v1990_v56 = vld [vmem:[%s1670_s4 + $0xe8] sm:$0xff] }
  0x95   : > { %v2250_v4 = vcombine.low %v1717_v16, %v1730_v24  ;;  %v736_v39 = vadd.f32 %v735_v10, %v636_v23  ;;  %v741_v46 = vadd.f32 %v740_v26, %v640_v19  ;;  %v310_v54 = vunpack.c.l.bf16 %v1960_v47 }
  0x96   : > { %v644_v62 = vmul.f32 %v306_v12, %v306_v12  ;;  %v2251_v35 = vcombine.high %v1741_v30, %v1744_v31  ;;  %v643_v20 = vmul.f32 %v305_v9, %v305_v9  ;;  %v311_v27 = vunpack.c.h.bf16 %v1960_v47 }
  0x97   : > { %1106 = vmatpush1.bf16.xpose.msra.mxu1 %v2248_v17  ;;  %v645_v7 = vmul.f32 %v307_v8, %v307_v8  ;;  %v646_v13 = vmul.f32 %v308_v21, %v308_v21  ;;  %v737_v22 = vadd.f32 %v736_v39, %v637_v18  ;;  %v742_v57 = vadd.f32 %v741_v46, %v641_v5 }
  0x98   : > { %1108 = vmatprep.subr.bf16.mxu1 %v2249_v36  ;;  %v647_v48 = vmul.f32 %v309_v52, %v309_v52  ;;  %v312_v38 = vunpack.c.l.bf16 %v1818_v25  ;;  %v313_v33 = vunpack.c.h.bf16 %v1818_v25  ;;  %v314_v23 = vunpack.c.l.bf16 %v1711_v14 }
  0x99   : > { %v747_v6 = vadd.f32 %v645_v7, %v644_v62  ;;  %v315_v3 = vunpack.c.h.bf16 %v1711_v14  ;;  %738 = vadd.xlane.f32.xlu1 %v737_v22  ;;  %v743_v2 = vadd.f32 %v742_v57, %v642_v0  ;;  %v648_v28 = vmul.f32 %v310_v54, %v310_v54  ;;  %v2008_v22 = vld [vmem:[%s1670_s4 + $0x100] sm:$0xff] }
  0x9a   : > { %1142 = vmatpush1.bf16.xpose.msra.mxu0 %v2250_v4  ;;  %v316_v40 = vunpack.c.l.bf16 %v1978_v61  ;;  %v650_v29 = vmul.f32 %v312_v38, %v312_v38  ;;  %v649_v58 = vmul.f32 %v311_v27, %v311_v27  ;;  %v651_v18 = vmul.f32 %v313_v33, %v313_v33 }
  0x9b   : > { %1144 = vmatprep.subr.bf16.mxu0 %v2251_v35  ;;  %v748_v34 = vadd.f32 %v747_v6, %v646_v13  ;;  %v652_v9 = vmul.f32 %v314_v23, %v314_v23  ;;  %v2252_v19 = vcombine.low %v1834_v43, %v1837_v44  ;;  %v744_v25 = vadd.f32 %v743_v2, %v643_v20 }
  0x9c   : > { %v317_v5 = vunpack.c.h.bf16 %v1978_v61  ;;  %v653_v17 = vmul.f32 %v315_v3, %v315_v3  ;;  %v318_v14 = vunpack.c.l.bf16 %v1831_v37  ;;  %v2253_v10 = vcombine.high %v1846_v49, %v1849_v53 }
  0x9d   : > { %v749_v26 = vadd.f32 %v748_v34, %v647_v48  ;;  %v754_v12 = vadd.f32 %v651_v18, %v650_v29  ;;  %v319_v36 = vunpack.c.h.bf16 %v1831_v37  ;;  %v320_v0 = vunpack.c.l.bf16 %v1714_v15  ;;  %745 = vadd.xlane.f32.xlu0 %v744_v25 }
  0x9e   : > { %v2254_v8 = vcombine.low %v1741_v30, %v1744_v31  ;;  %v654_v21 = vmul.f32 %v316_v40, %v316_v40  ;;  %v321_v52 = vunpack.c.h.bf16 %v1714_v15  ;;  %v322_v4 = vunpack.c.l.bf16 %v1990_v56 }
  0x9f   : > { %1110 = vmatpush1.bf16.xpose.msra.mxu1 %v2252_v19  ;;  %v656_v39 = vmul.f32 %v318_v14, %v318_v14  ;;  %v2255_v46 = vcombine.high %v1760_v41, %v1763_v42  ;;  %v750_v54 = vadd.f32 %v749_v26, %v648_v28  ;;  %v755_v37 = vadd.f32 %v754_v12, %v652_v9 }
  0xa0   : > { %1112 = vmatprep.subr.bf16.mxu1 %v2253_v10  ;;  %v657_v62 = vmul.f32 %v319_v36, %v319_v36  ;;  %v658_v35 = vmul.f32 %v320_v0, %v320_v0  ;;  %v655_v20 = vmul.f32 %v317_v5, %v317_v5  ;;  %v323_v27 = vunpack.c.h.bf16 %v1990_v56  ;;  %v2026_v10 = vld [vmem:[%s1670_s4 + $0x118] sm:$0xff] }
  0xa1   : > { %v659_v7 = vmul.f32 %v321_v52, %v321_v52  ;;  %v324_v13 = vunpack.c.l.bf16 %v1834_v43  ;;  %v751_v15 = vadd.f32 %v750_v54, %v649_v58  ;;  %v756_v57 = vadd.f32 %v755_v37, %v653_v17 }
  0xa2   : > { %1146 = vmatpush1.bf16.xpose.msra.mxu0 %v2254_v8  ;;  %v761_v48 = vadd.f32 %v657_v62, %v656_v39  ;;  %v325_v38 = vunpack.c.h.bf16 %v1834_v43  ;;  %v660_v6 = vmul.f32 %v322_v4, %v322_v4  ;;  %v326_v33 = vunpack.c.l.bf16 %v1717_v16 }
  0xa3   : > { %1148 = vmatprep.subr.bf16.mxu0 %v2255_v46  ;;  %v327_v23 = vunpack.c.h.bf16 %v1717_v16  ;;  %v328_v3 = vunpack.c.l.bf16 %v2008_v22  ;;  %752 = vadd.xlane.f32.xlu1 %v751_v15  ;;  %v757_v2 = vadd.f32 %v756_v57, %v654_v21  ;;  %v662_v40 = vmul.f32 %v324_v13, %v324_v13 }
  0xa4   : > { %v762_v28 = vadd.f32 %v761_v48, %v658_v35  ;;  %v663_v29 = vmul.f32 %v325_v38, %v325_v38  ;;  %v2256_v58 = vcombine.low %v1846_v49, %v1849_v53  ;;  %v661_v34 = vmul.f32 %v323_v27, %v323_v27  ;;  %v2038_v27 = vld [vmem:[%s1670_s4 + $0x130] sm:$0xff] }
  0xa5   : > { %v329_v43 = vunpack.c.h.bf16 %v2008_v22  ;;  %v664_v18 = vmul.f32 %v326_v33, %v326_v33  ;;  %v665_v9 = vmul.f32 %v327_v23, %v327_v23  ;;  %v2257_v16 = vcombine.high %v1861_v60, %v1864_v59 }
  0xa6   : > { %v758_v19 = vadd.f32 %v757_v2, %v655_v20  ;;  %v763_v25 = vadd.f32 %v762_v28, %v659_v7  ;;  %v768_v5 = vadd.f32 %v663_v29, %v662_v40  ;;  %v330_v17 = vunpack.c.l.bf16 %v1837_v44 }
  0xa7   : > { %1114 = vmatpush1.bf16.xpose.msra.mxu1 %v2256_v58  ;;  %v2258_v14 = vcombine.low %v1760_v41, %v1763_v42  ;;  %v666_v26 = vmul.f32 %v328_v3, %v328_v3  ;;  %v331_v12 = vunpack.c.h.bf16 %v1837_v44  ;;  %v332_v36 = vunpack.c.l.bf16 %v1730_v24 }
  0xa8   : > { %1116 = vmatprep.subr.bf16.mxu1 %v2257_v16  ;;  %v333_v0 = vunpack.c.h.bf16 %v1730_v24  ;;  %v2259_v8 = vcombine.high %v1773_v50, %v1776_v51  ;;  %759 = vadd.xlane.f32.xlu0 %v758_v19  ;;  %v764_v21 = vadd.f32 %v763_v25, %v660_v6  ;;  %v769_v52 = vadd.f32 %v768_v5, %v664_v18  ;;  %v2054_v18 = vld [vmem:[%s1670_s4 + $0x148] sm:$0xff] }
  0xa9   : > { %v334_v4 = vunpack.c.l.bf16 %v2026_v10  ;;  %v668_v39 = vmul.f32 %v330_v17, %v330_v17  ;;  %v667_v46 = vmul.f32 %v329_v43, %v329_v43  ;;  %v335_v54 = vunpack.c.h.bf16 %v2026_v10  ;;  %v2263_v5 = vld [vmem:[#allocation13_spill] sm:$0xff] }
  0xaa   : > { %1150 = vmatpush1.bf16.xpose.msra.mxu0 %v2258_v14  ;;  %v669_v37 = vmul.f32 %v331_v12, %v331_v12  ;;  %v670_v44 = vmul.f32 %v332_v36, %v332_v36  ;;  %v765_v62 = vadd.f32 %v764_v21, %v661_v34  ;;  %v770_v35 = vadd.f32 %v769_v52, %v665_v9 }
  0xab   : > { %1152 = vmatprep.subr.bf16.mxu0 %v2259_v8  ;;  %v671_v20 = vmul.f32 %v333_v0, %v333_v0  ;;  %v336_v24 = vunpack.c.l.bf16 %v1846_v49  ;;  %v337_v13 = vunpack.c.h.bf16 %v1846_v49  ;;  %v338_v15 = vunpack.c.l.bf16 %v1741_v30  ;;  %v2261_v49 = vld [vmem:[#allocation14_spill] sm:$0xff] }
  0xac   : > { %v775_v7 = vadd.f32 %v669_v37, %v668_v39  ;;  %v339_v57 = vunpack.c.h.bf16 %v1741_v30  ;;  %766 = vadd.xlane.f32.xlu1 %v765_v62  ;;  %v771_v48 = vadd.f32 %v770_v35, %v666_v26  ;;  %v672_v38 = vmul.f32 %v334_v4, %v334_v4  ;;  %v2067_v4 = vld [vmem:[%s1670_s4 + $0x160] sm:$0xff] }
  0xad   : > { %v340_v6 = vunpack.c.l.bf16 %v2038_v27  ;;  %v674_v33 = vmul.f32 %v336_v24, %v336_v24  ;;  %v2260_v23 = vcombine.low %v1861_v60, %v1864_v59  ;;  %v673_v3 = vmul.f32 %v335_v54, %v335_v54  ;;  %v2265_v37 = vld [vmem:[#allocation15_spill] sm:$0xff] }
  0xae   : > { %v776_v2 = vadd.f32 %v775_v7, %v670_v44  ;;  %v675_v28 = vmul.f32 %v337_v13, %v337_v13  ;;  %v676_v40 = vmul.f32 %v338_v15, %v338_v15  ;;  %v772_v29 = vadd.f32 %v771_v48, %v667_v46 }
  0xaf   : > { %1118 = vmatpush1.bf16.xpose.msra.mxu1 %v2260_v23  ;;  %v341_v30 = vunpack.c.h.bf16 %v2038_v27  ;;  %v677_v58 = vmul.f32 %v339_v57, %v339_v57  ;;  %v342_v34 = vunpack.c.l.bf16 %v1849_v53  ;;  %v2262_v43 = vcombine.low %v1773_v50, %v1776_v51 }
  0xb0   : > { %v777_v9 = vadd.f32 %v776_v2, %v671_v20  ;;  %v782_v16 = vadd.f32 %v675_v28, %v674_v33  ;;  %v343_v19 = vunpack.c.h.bf16 %v1849_v53  ;;  %v344_v25 = vunpack.c.l.bf16 %v1744_v31  ;;  %773 = vadd.xlane.f32.xlu0 %v772_v29  ;;  %v263_v29 = vld [vmem:[%s1670_s4 + $0x178] sm:$0xff] }
  0xb1   : > { %527 = vmatmul.mubr.f32.vlgmr.msra.gmra.mrb[0].mxu0 %v2261_v49  ;;  %v2264_v17 = vcombine.high %v2263_v5, %v1786_v55  ;;  %v678_v14 = vmul.f32 %v340_v6, %v340_v6  ;;  %v345_v50 = vunpack.c.h.bf16 %v1744_v31  ;;  %v346_v51 = vunpack.c.l.bf16 %v2054_v18 }
  0xb2   : > { %1154 = vmatpush1.bf16.xpose.msra.mxu0 %v2262_v43  ;;  %596 = vmatprep.mubr.f32.mxu0 %v1903_v45  ;;  %v680_v26 = vmul.f32 %v342_v34, %v342_v34  ;;  %v778_v12 = vadd.f32 %v777_v9, %v672_v38  ;;  %v783_v45 = vadd.f32 %v782_v16, %v676_v40  ;;  %v347_v53 = vunpack.c.h.bf16 %v2054_v18 }
  0xb3   : > { %1156 = vmatprep.subr.bf16.mxu0 %v2264_v17  ;;  %v681_v36 = vmul.f32 %v343_v19, %v343_v19  ;;  %v682_v0 = vmul.f32 %v344_v25, %v344_v25  ;;  %v679_v8 = vmul.f32 %v341_v30, %v341_v30  ;;  %v683_v21 = vmul.f32 %v345_v50, %v345_v50 }
  0xb4   : > { %v348_v52 = vunpack.c.l.bf16 %v1861_v60  ;;  %v779_v39 = vadd.f32 %v778_v12, %v673_v3  ;;  %v784_v46 = vadd.f32 %v783_v45, %v677_v58  ;;  %v349_v31 = vunpack.c.h.bf16 %v1861_v60 }
  0xb5   : > { %v789_v54 = vadd.f32 %v681_v36, %v680_v26  ;;  %v684_v44 = vmul.f32 %v346_v51, %v346_v51  ;;  %v350_v62 = vunpack.c.l.bf16 %v1760_v41  ;;  %v351_v35 = vunpack.c.h.bf16 %v1760_v41 }
  0xb6   : > { %457 = vmatmul.mubr.f32.vlgmr.msra.gmra.mrb[0].mxu1 %v2265_v37  ;;  %v352_v20 = vunpack.c.l.bf16 %v2067_v4  ;;  %780 = vadd.xlane.f32.xlu1 %v779_v39  ;;  %v785_v24 = vadd.f32 %v784_v46, %v678_v14  ;;  %v686_v13 = vmul.f32 %v348_v52, %v348_v52  ;;  %v687_v15 = vmul.f32 %v349_v31, %v349_v31 }
  0xb7   : > { %v790_v7 = vadd.f32 %v789_v54, %v682_v0  ;;  %v685_v57 = vmul.f32 %v347_v53, %v347_v53  ;;  %v353_v48 = vunpack.c.h.bf16 %v2067_v4  ;;  %v688_v38 = vmul.f32 %v350_v62, %v350_v62 }
  0xb8   : > { %v689_v60 = vmul.f32 %v351_v35, %v351_v35  ;;  %v2266_v6 = vcombine.low %v2263_v5, %v1786_v55  ;;  %v786_v33 = vadd.f32 %v785_v24, %v679_v8  ;;  %v796_v41 = vadd.f32 %v687_v15, %v686_v13 }
  0xb9   : > { %v791_v23 = vadd.f32 %v790_v7, %v683_v21  ;;  %v354_v3 = vunpack.c.l.bf16 %v1864_v59  ;;  %v2267_v2 = vcombine.high %v1800_v63, %v1803_v1  ;;  %v355_v28 = vunpack.c.h.bf16 %v1864_v59 }
  0xba   : > { %1158 = vmatpush1.bf16.xpose.msra.mxu0 %v2266_v6  ;;  %v356_v40 = vunpack.c.l.bf16 %v1763_v42  ;;  %v357_v49 = vunpack.c.h.bf16 %v1763_v42  ;;  %787 = vadd.xlane.f32.xlu0 %v786_v33  ;;  %v690_v55 = vmul.f32 %v352_v20, %v352_v20  ;;  %v797_v58 = vadd.f32 %v796_v41, %v688_v38 }
  0xbb   : > { %1160 = vmatprep.subr.bf16.mxu0 %v2267_v2  ;;  %v792_v30 = vadd.f32 %v791_v23, %v684_v44  ;;  %v692_v34 = vmul.f32 %v354_v3, %v354_v3  ;;  %v358_v43 = vunpack.c.l.bf16 %v263_v29  ;;  %v693_v9 = vmul.f32 %v355_v28, %v355_v28 }
  0xbc   : > { %v694_v16 = vmul.f32 %v356_v40, %v356_v40  ;;  %v1223_v19 = vcombine.low %v1800_v63, %v1803_v1  ;;  %v691_v5 = vmul.f32 %v353_v48, %v353_v48  ;;  %v798_v17 = vadd.f32 %v797_v58, %v689_v60 }
  0xbd   : > { %v793_v25 = vadd.f32 %v792_v30, %v685_v57  ;;  %v1224_v59 = vcombine.high %v1947_v11, %v1960_v47  ;;  %v359_v14 = vunpack.c.h.bf16 %v263_v29  ;;  %v695_v42 = vmul.f32 %v357_v49, %v357_v49 }
  0xbe   : > { %v803_v50 = vadd.f32 %v693_v9, %v692_v34  ;;  %v799_v51 = vadd.f32 %v798_v17, %v690_v55  ;;  %v696_v26 = vmul.f32 %v358_v43, %v358_v43  ;;  %v1225_v1 = vcombine.low %v1947_v11, %v1960_v47 }
  0xbf   : > { %794 = vadd.xlane.f32.xlu1 %v793_v25  ;;  %v697_v36 = vmul.f32 %v359_v14, %v359_v14  ;;  %v1226_v8 = vcombine.high %v1978_v61, %v1990_v56  ;;  %v1227_v21 = vcombine.low %v1978_v61, %v1990_v56  ;;  %v1228_v52 = vcombine.high %v2008_v22, %v2026_v10  ;;  %v2268_v56 = vld [vmem:[#allocation12_spill] sm:$0xff] }
  0xc0   : > { %v804_v12 = vadd.f32 %v803_v50, %v694_v16  ;;  %v800_v45 = vadd.f32 %v799_v51, %v691_v5  ;;  %v1229_v39 = vcombine.low %v2008_v22, %v2026_v10  ;;  %v1230_v11 = vcombine.high %v2038_v27, %v2054_v18 }
  0xc1   : > { %v1231_v47 = vcombine.low %v2038_v27, %v2054_v18  ;;  %v1232_v46 = vcombine.high %v2067_v4, %v263_v29  ;;  %v1233_v61 = vcombine.low %v2067_v4, %v263_v29  ;;  %v380_v54 = vsub.s32 4, %v2268_v56 }
  0xc2   : > { %1162 = vmatpush1.bf16.xpose.msra.mxu0 %v1223_v19  ;;  %v805_v0 = vadd.f32 %v804_v12, %v695_v42  ;;  %801 = vadd.xlane.f32.xlu0 %v800_v45  ;;  %v2269_v62 = vlaneseq  ;;  %v2114_v13 = vstv %s826_s24  ;;  %vm906_vm5 = vcmask 458112  }
  0xc3   : > { %1164 = vmatprep.subr.bf16.mxu0 %v1224_v59  ;;  %v381_v31 = vrot.slane %v1746_v32, %v380_v54  ;;  %vm913_vm6 = vcmask 523712   ;;  %vm920_vm7 = vcmask 589312   ;;  %vm927_vm8 = vcmask 654912  }
  0xc4   : > { %v806_v63 = vadd.f32 %v805_v0, %v696_v26  ;;  %v2111_v35 = vand.u32 127, %v2269_v62  ;;  %vm934_vm9 = vcmask 720512   ;;  %vm941_vm10 = vcmask 786112  }
  0xc5   : > { %vm948_vm11 = vcmask 851712   ;;  %vm955_vm12 = vcmask 917312   ;;  %vm962_vm13 = vcmask 982912   ;;  %vm969_vm14 = vcmask 1048512  }
  0xc6   : > { %v807_v53 = vadd.f32 %v806_v63, %v697_v36  ;;  %v866_v32 = vadd.s32 4294967288, %v2111_v35  ;;  %v873_v15 = vadd.s32 4294967280, %v2111_v35  ;;  %v864_v38 = vsub.s32 %v2111_v35, %v2268_v56 }
  0xc7   : > { %v880_v23 = vadd.s32 4294967272, %v2111_v35  ;;  %v887_v29 = vadd.s32 4294967264, %v2111_v35  ;;  %v894_v16 = vadd.s32 4294967256, %v2111_v35  ;;  %v901_v42 = vadd.s32 4294967248, %v2111_v35 }
  0xc8   : > { %808 = vadd.xlane.f32.xlu1 %v807_v53  ;;  %v869_v6 = vsub.s32 %v866_v32, %v2268_v56  ;;  %v876_v2 = vsub.s32 %v873_v15, %v2268_v56  ;;  %v908_v0 = vadd.s32 4294967240, %v2111_v35 }
  0xc9   : > { %v883_v58 = vsub.s32 %v880_v23, %v2268_v56  ;;  %v890_v5 = vsub.s32 %v887_v29, %v2268_v56  ;;  %v897_v26 = vsub.s32 %v894_v16, %v2268_v56 }
  0xca   : > { %1166 = vmatpush1.bf16.xpose.msra.mxu0 %v1225_v1 }
  0xcb   : > { %1168 = vmatprep.subr.bf16.mxu0 %v1226_v8  ;;  %v904_v8 = vsub.s32 %v901_v42, %v2268_v56  ;;  %v964_v42 = vadd.s32 4294967176, %v2111_v35 }
  0xd2   : > { %1170 = vmatpush1.bf16.xpose.msra.mxu0 %v1227_v21 }
  0xd3   : > { %1172 = vmatprep.subr.bf16.mxu0 %v1228_v52 }
  0xda   : > { %1174 = vmatpush1.bf16.xpose.msra.mxu0 %v1229_v39  ;;  %v915_v39 = vadd.s32 4294967232, %v2111_v35 }
  0xdb   : > { %1176 = vmatprep.subr.bf16.mxu0 %v1230_v11 }
  0xe2   : > { %1178 = vmatpush1.bf16.xpose.msra.mxu0 %v1231_v47 }
  0xe3   : > { %1180 = vmatprep.subr.bf16.mxu0 %v1232_v46  ;;  %v911_v46 = vsub.s32 %v908_v0, %v2268_v56  ;;  %v967_v0 = vsub.s32 %v964_v42, %v2268_v56 }
  0xea   : > { %1182 = vmatpush1.bf16.xpose.msra.mxu0 %v1233_v61 }
  0xf1   : > { %597 = vmatmul.mubr.f32.vlgmr.msra.gmra.mrb[0].mxu0 %v381_v31 }
 0x113   : > { %v704_v22 = vpop.xlane.xlu0 %703 }
 0x114   : > { %1338 = vrsqrt.f32 %v704_v22  ;;  %v922_v22 = vadd.s32 4294967224, %v2111_v35 }
 0x116   : > { %v718_v10 = vpop.xlane.xlu1 %717 }
 0x11a   : > { %v711_v37 = vpop.xlane.xlu0 %710 }
 0x11b   : > { %1340 = vrsqrt.f32 %v711_v37 }
 0x11c   : > { %1342 = vrsqrt.f32 %v718_v10 }
 0x11e   : > { %v725_v27 = vpop.xlane.xlu1 %724  ;;  %v1339_v20 = vpop.eup %1338 }
 0x11f   : > { %1344 = vrsqrt.f32 %v725_v27  ;;  %v828_v60 = vmul.f32 %v1339_v20, %v2114_v13  ;;  %v918_v27 = vsub.s32 %v915_v39, %v2268_v56  ;;  %v929_v20 = vadd.s32 4294967216, %v2111_v35 }
 0x121   : > { %v732_v4 = vpop.xlane.xlu0 %731  ;;  %v865_v40 = vrot.slane %v828_v60, %v864_v38  ;;  %v936_v38 = vadd.s32 4294967208, %v2111_v35 }
 0x122   : > { %1346 = vrsqrt.f32 %v732_v4 }
 0x125   : > { %v1341_v7 = vpop.eup %1340 }
 0x126   : > { %v739_v24 = vpop.xlane.xlu1 %738  ;;  %v1343_v48 = vpop.eup %1342  ;;  %v829_v33 = vmul.f32 %v1341_v7, %v2114_v13  ;;  %v925_v7 = vsub.s32 %v922_v22, %v2268_v56 }
 0x127   : > { %1348 = vrsqrt.f32 %v739_v24  ;;  %v830_v28 = vmul.f32 %v1343_v48, %v2114_v13 }
 0x128   : > { %v870_v49 = vrot.slane %v829_v33, %v869_v6  ;;  %v932_v33 = vsub.s32 %v929_v20, %v2268_v56 }
 0x129   : > { %v1345_v3 = vpop.eup %1344  ;;  %v877_v43 = vrot.slane %v830_v28, %v876_v2  ;;  %v943_v2 = vadd.s32 4294967200, %v2111_v35 }
 0x12a   : > { %v746_v57 = vpop.xlane.xlu0 %745  ;;  %v831_v34 = vmul.f32 %v1345_v3, %v2114_v13  ;;  %v872_v9 = vsel %vm871_vm0, %v870_v49, %v865_v40  ;;  %v939_v40 = vsub.s32 %v936_v38, %v2268_v56 }
 0x12b   : > { %1350 = vrsqrt.f32 %v746_v57  ;;  %v879_v14 = vsel %vm878_vm1, %v877_v43, %v872_v9 }
 0x12c   : > { %v1347_v55 = vpop.eup %1346  ;;  %v884_v59 = vrot.slane %v831_v34, %v883_v58  ;;  %v946_v34 = vsub.s32 %v943_v2, %v2268_v56 }
 0x12d   : > { %v832_v17 = vmul.f32 %v1347_v55, %v2114_v13  ;;  %v950_v55 = vadd.s32 4294967192, %v2111_v35 }
 0x12e   : > { %v886_v36 = vsel %vm885_vm2, %v884_v59, %v879_v14 }
 0x12f   : > { %v891_v45 = vrot.slane %v832_v17, %v890_v5  ;;  %v953_v17 = vsub.s32 %v950_v55, %v2268_v56 }
 0x130   : > { %v753_v41 = vpop.xlane.xlu1 %752 }
 0x131   : > { %1352 = vrsqrt.f32 %v753_v41  ;;  %v1349_v25 = vpop.eup %1348  ;;  %v893_v52 = vsel %vm892_vm3, %v891_v45, %v886_v36 }
 0x132   : > { %v833_v12 = vmul.f32 %v1349_v25, %v2114_v13 }
 0x134   : > { %v898_v21 = vrot.slane %v833_v12, %v897_v26 }
 0x135   : > { %v760_v30 = vpop.xlane.xlu0 %759  ;;  %v1351_v51 = vpop.eup %1350 }
 0x136   : > { %1354 = vrsqrt.f32 %v760_v30  ;;  %v834_v53 = vmul.f32 %v1351_v51, %v2114_v13  ;;  %v900_v31 = vsel %vm899_vm4, %v898_v21, %v893_v52 }
 0x138   : > { %v905_v54 = vrot.slane %v834_v53, %v904_v8 }
 0x139   : > { %v767_v19 = vpop.xlane.xlu1 %766 }
 0x13a   : > { %1356 = vrsqrt.f32 %v767_v19  ;;  %v907_v4 = vsel %vm906_vm5, %v905_v54, %v900_v31  ;;  %v957_v19 = vadd.s32 4294967184, %v2111_v35 }
 0x13b   : > { %v1353_v1 = vpop.eup %1352 }
 0x13c   : > { %v835_v61 = vmul.f32 %v1353_v1, %v2114_v13  ;;  %v960_v26 = vsub.s32 %v957_v19, %v2268_v56  ;;  %v974_v1 = vstv %s1083_s27 }
 0x13d   : > { %v774_v50 = vpop.xlane.xlu0 %773  ;;  %v975_v21 = vadd.s32 %v974_v1, %v2111_v35 }
 0x13e   : > { %1358 = vrsqrt.f32 %v774_v50  ;;  %v912_v62 = vrot.slane %v835_v61, %v911_v46 }
 0x13f   : > { %vm976_vm15 = vcmp.lt.s32.totalorder %v975_v21, 600 }
 0x140   : > { %v1355_v47 = vpop.eup %1354  ;;  %v914_v48 = vsel %vm913_vm6, %v912_v62, %v907_v4 }
 0x143   : > { %v781_v63 = vpop.xlane.xlu1 %780 }
 0x144   : > { %1360 = vrsqrt.f32 %v781_v63  ;;  %v1357_v37 = vpop.eup %1356 }
 0x145   : > { %v837_v15 = vmul.f32 %v1357_v37, %v2114_v13 }
 0x147   : > { %v788_v11 = vpop.xlane.xlu0 %787  ;;  %v926_v41 = vrot.slane %v837_v15, %v925_v7 }
 0x148   : > { %1362 = vrsqrt.f32 %v788_v11  ;;  %v1359_v24 = vpop.eup %1358 }
 0x149   : > { %v838_v23 = vmul.f32 %v1359_v24, %v2114_v13 }
 0x14b   : > { %v933_v29 = vrot.slane %v838_v23, %v932_v33 }
 0x14c   : > { %v795_v10 = vpop.xlane.xlu1 %794 }
 0x14d   : > { %1364 = vrsqrt.f32 %v795_v10 }
 0x14e   : > { %v1361_v6 = vpop.eup %1360 }
 0x14f   : > { %v802_v32 = vpop.xlane.xlu0 %801  ;;  %v839_v49 = vmul.f32 %v1361_v6, %v2114_v13 }
 0x150   : > { %1366 = vrsqrt.f32 %v802_v32 }
 0x151   : > { %v940_v9 = vrot.slane %v839_v49, %v939_v40 }
 0x152   : > { %v1363_v28 = vpop.eup %1362 }
 0x153   : > { %v840_v43 = vmul.f32 %v1363_v28, %v2114_v13 }
 0x155   : > { %v809_v60 = vpop.xlane.xlu1 %808  ;;  %v947_v59 = vrot.slane %v840_v43, %v946_v34 }
 0x156   : > { %1368 = vrsqrt.f32 %v809_v60 }
 0x157   : > { %v1365_v58 = vpop.eup %1364 }
 0x158   : > { %v841_v5 = vmul.f32 %v1365_v58, %v2114_v13 }
 0x15a   : > { %v1367_v25 = vpop.eup %1366  ;;  %v954_v12 = vrot.slane %v841_v5, %v953_v17 }
 0x15b   : > { %v842_v51 = vmul.f32 %v1367_v25, %v2114_v13 }
 0x15d   : > { %v961_v63 = vrot.slane %v842_v51, %v960_v26 }
 0x160   : > { %v1369_v50 = vpop.eup %1368 }
 0x161   : > { %v843_v36 = vmul.f32 %v1369_v50, %v2114_v13 }
 0x163   : > { %v968_v53 = vrot.slane %v843_v36, %v967_v0 }
 0x189   : > { %v2108_v18 = vpop.f32.mrb[0].mxu1 }
 0x18a   : > { %v460_v44 = vpop.f32.mrb[1].mxu1 }
 0x18b   : > { %v836_v44 = vmul.f32 %v1355_v47, %v2114_v13 }
 0x18d   : > { %v919_v57 = vrot.slane %v836_v44, %v918_v27 }
 0x18f   : > { %v921_v3 = vsel %vm920_vm7, %v919_v57, %v914_v48 }
 0x190   : > { %v928_v30 = vsel %vm927_vm8, %v926_v41, %v921_v3 }
 0x191   : > { %v935_v16 = vsel %vm934_vm9, %v933_v29, %v928_v30 }
 0x192   : > { %v942_v14 = vsel %vm941_vm10, %v940_v9, %v935_v16 }
 0x193   : > { %v949_v45 = vsel %vm948_vm11, %v947_v59, %v942_v14 }
 0x194   : > { %v956_v8 = vsel %vm955_vm12, %v954_v12, %v949_v45 }
 0x195   : > { %v963_v52 = vsel %vm962_vm13, %v961_v63, %v956_v8 }
 0x196   : > { %v970_v13 = vsel %vm969_vm14, %v968_v53, %v963_v52 }
 0x1c4   : > { %v598_v39 = vpop.f32.mrb[0].mxu0 }
 0x1c5   : > { %v1183_v11 = vadd.f32 %v598_v39, %v2108_v18  ;;  %v600_v47 = vpop.f32.mrb[1].mxu0 }
 0x1c7   : > { %v972_v56 = vmul.f32 %v1183_v11, %v970_v13 }
 0x1c9   : > { %v977_v35 = vsel %vm976_vm15, %v972_v56, 0.0 }
 0x1ca   : > { %978 = vst [vmem:[%s209_s6] sm:$0x1] %v977_v35 }
 0x1cb   : > { %1439 = shalt.err (!%p1436_p6)
}
 0x1cc   : > { %s1440_s29 = scalar_lea.hbm %s2171_s18, 16  ;;  %s1444_s8 = scalar_lea.hbm %s2217_s3, 80 }
 0x1cd   : > { %p1441_p11 = scmp.ne.s32.totalorder %s2171_s18, %s1440_s29  ;;  %p1445_p2 = scmp.lt.u32.totalorder %s2171_s18, %s2217_s3 }
 0x1ce   : > { %p1446_p3 = scmp.lt.u32.totalorder %s1444_s8, %s1440_s29  ;;  %p1448_p8 = scmp.lt.u32.totalorder %s1440_s29, %s2171_s18 }
 0x1cf   : > { %p1442_p13 = pnand %p1441_p11, %p2270_p9 }
 0x1d0   : > { %p1447_p5 = por %p1446_p3, %p1445_p2 }
 0x1d1   : > { %p1443_p12 = pneg %p1442_p13 }
 0x1d2   : > { %p1449_p10 = por %p1448_p8, %p1447_p5 }
 0x1d4   : > { %p1450_p1 = pnand %p1449_p10, %p1443_p12 }
 0x1d6   : > { %1453 = shalt.err (!%p1450_p1)
}
 0x1d7   : > { %1242 = dma.vmem_to_hbm [thread:$0]  (%p2270_p9), %s2173_s9, 16, %s2171_s18, %s980_s20  }
 0x1d8 PF: > { %p1254_p0 = scmp.ge.s32.totalorder %s1496_s17, 2  ;;  %s1004_s4 = sand.u32 1, %s1484_s14  }
 0x1d9   : > { %p2271_p7 = scmp.ne.s32.totalorder %s2230_s26, 0  ;;  %s1005_s24 = scalar_lea.sflag [#allocation5], %s1004_s4 }
 0x1db   : > { %p1249_p4 = pnand %p1254_p0, %p2271_p7 }
 0x1dd   : > { %1479 = dma.done.wait (!%p1249_p4), %s1005_s24, 16  }
 0x1de   : > { %1481 = vsyncadd (!%p1249_p4), %s1005_s24, 4294967280  ;;  %p18_p6 = scmp.ge.s32.totalorder %s1551_s19, 7   ;;  %s2272_s14 = smov %s1488_s15 }
 0x1df   : > { %s2273_s15 = smov %s1492_s16  ;;  %s2274_s16 = smov %s1563_s22 }
 0x1e0   : > { %s2275_s17 = smov %s1551_s19  ;;  %20 = sbr.rel (!%p18_p6) target bundleno = 8 (0x8), region = 82 }
 0x1e7   :  { %1009 = vsyncpa [#allocation4], 1 }
 0x1e8   :  { %1011 = vsyncpa [#allocation4 + $0x1], 1 }
 0x1e9   :  { %1012 = vsyncpa [#allocation7], 1 }
 0x1ea   :  { %1014 = vsyncpa [#allocation7 + $0x1], 1 }
 0x1eb   :  { %1015 = vsyncpa [#allocation5], 1 }
 0x1ec   :  { %1017 = vsyncpa [#allocation5 + $0x1], 1 }

</bundles_post_ra>
